<compile_context>
chip_gen: v6e
topology: v6e:2x2x1
jax: 0.10.0
libtpu: 0.0.40
codegen_flags: <defaults>
</compile_context>

<pallas_src>
import jax
import jax.numpy as jnp
from jax.experimental import pallas as pl
from jax.experimental.pallas import tpu as pltpu


def _round_up(x, m):
    return (x + m - 1) // m * m


def _cdiv(a, b):
    return -(-a // b)


def _critic_kernel(x_ref, w1_ref, b1_ref, w2_ref, b2_ref, o_ref):
    # Layer 1 (state_dim -> 64) on the MXU, f32 accumulation.
    h = jnp.dot(x_ref[...], w1_ref[...],
                preferred_element_type=jnp.float32)            # [T, H] f32
    h = jnp.maximum(h + b1_ref[...], 0.0)                      # bias + ReLU (VPU, f32)

    # Layer 2 (64 -> 1) also on the MXU: result stays sublane-major (T, 1), so no
    # XLU lane-relayout is needed before the store.
    v = jnp.dot(h, w2_ref[...], preferred_element_type=jnp.float32)   # [T, 1] f32
    o_ref[...] = (v + b2_ref[0]).astype(o_ref.dtype)


def critic_forward(state, w1, b1, w2, b2, *, tile_b=8192):
    """state: [B, state_dim]. Returns value: [B, 1] float32.

    The activation stream is used exactly as passed (no wrapper cast / pad): to
    use the bf16 bandwidth path, hand in `state` already in bf16.
    """
    B, D = state.shape
    H = w1.shape[1]  # 64

    # Batch tile: as large as tile_b allows (amortizes ~0.35us per-grid-step
    # overhead). Multiple of 8 sublanes suffices since the output block is 2-D.
    tile = min(_round_up(B, 8), _round_up(tile_b, 128))
    num_tiles = _cdiv(B, tile)
    # v7x megacore: the "parallel" batch axis needs >= 2 steps to feed both
    # TensorCores; split large single-tile batches in two.
    if num_tiles == 1 and B >= 1024:
        tile = _round_up(_cdiv(B, 2), 128)
        num_tiles = _cdiv(B, tile)
    Bp = num_tiles * tile

    x = state                                    # streamed as-is: no astype / pad copy
    w1c = w1.astype(x.dtype)                     # tiny resident operands
    b1_2d = b1.reshape(1, H).astype(jnp.float32)
    w2c = w2.reshape(H, 1).astype(jnp.float32)
    b2_1d = b2.reshape(1).astype(jnp.float32)

    LANE = 128
    x_bytes = jnp.dtype(x.dtype).itemsize
    # Double-buffered VMEM footprint; streamed blocks are lane-padded to 128.
    vmem_need = 2 * (tile * _round_up(D, LANE) * x_bytes              # x blocks
                     + tile * LANE * 4                                # (tile, 1) out blocks
                     + _round_up(D, 8) * _round_up(H, LANE) * x_bytes  # W1
                     + 8 * _round_up(H, LANE) * 4                      # b1
                     + _round_up(H, 8) * LANE * 4)                     # W2
    vmem_limit = int(vmem_need * 1.25) + (2 << 20)

    cost = pl.CostEstimate(
        flops=2 * B * D * H + 3 * B * H + 2 * B * H,
        transcendentals=0,
        bytes_accessed=B * D * x_bytes + D * H * x_bytes
                       + H * 4 + H * 4 + 4 + Bp * 4,
    )

    out = pl.pallas_call(
        _critic_kernel,
        out_shape=jax.ShapeDtypeStruct((Bp, 1), jnp.float32),
        grid=(num_tiles,),
        in_specs=[
            pl.BlockSpec((tile, D), lambda i: (i, 0)),           # streamed activations
            pl.BlockSpec((D, H), lambda i: (0, 0)),              # resident W1
            pl.BlockSpec((1, H), lambda i: (0, 0)),              # resident b1
            pl.BlockSpec((H, 1), lambda i: (0, 0)),              # resident W2
            pl.BlockSpec(memory_space=pltpu.MemorySpace.SMEM),   # scalar b2
        ],
        out_specs=pl.BlockSpec((tile, 1), lambda i: (i, 0)),
        compiler_params=pltpu.CompilerParams(
            dimension_semantics=("parallel",),
            vmem_limit_bytes=vmem_limit),
        cost_estimate=cost,
    )(x, w1c, b1_2d, w2c, b2_1d)

    return out[:B]   # drop padded tail rows (they hold garbage-row results)


def init_critic_params(key, state_dim, hidden=64):
    """Deterministic init mirroring nn.Linear defaults (uniform +/- 1/sqrt(fan_in))."""
    k1, k2, k3, k4 = jax.random.split(key, 4)
    lim1 = 1.0 / jnp.sqrt(jnp.float32(state_dim))
    lim2 = 1.0 / jnp.sqrt(jnp.float32(hidden))
    w1 = jax.random.uniform(k1, (state_dim, hidden), jnp.float32, -lim1, lim1)
    b1 = jax.random.uniform(k2, (hidden,), jnp.float32, -lim1, lim1)
    w2 = jax.random.uniform(k3, (hidden, 1), jnp.float32, -lim2, lim2)
    b2 = jax.random.uniform(k4, (1,), jnp.float32, -lim2, lim2)
    return w1, b1, w2, b2


if __name__ == "__main__":
    key = jax.random.PRNGKey(0)
    k_params, k_state = jax.random.split(key)

    state_dim = 32
    hidden = 64
    w1, b1, w2, b2 = init_critic_params(k_params, state_dim, hidden)

    # --- small batch, f32 path (matches the nn.Module defaults) ---
    batch = 8
    state = jax.random.normal(k_state, (batch, state_dim), jnp.float32)
    value = jax.block_until_ready(critic_forward(state, w1, b1, w2, b2))
    ref = jnp.maximum(state @ w1 + b1, 0.0) @ w2 + b2
    assert value.shape == (batch, 1)
    assert jnp.allclose(value, ref, atol=1e-5, rtol=1e-5)

    # --- ragged batch exercising a multi-step grid with a partial last x block ---
    big_b = 300
    state_big = jax.random.normal(jax.random.PRNGKey(1), (big_b, state_dim), jnp.float32)
    value_big = jax.block_until_ready(
        critic_forward(state_big, w1, b1, w2, b2, tile_b=128))
    ref_big = jnp.maximum(state_big @ w1 + b1, 0.0) @ w2 + b2
    assert value_big.shape == (big_b, 1)
    assert jnp.allclose(value_big, ref_big, atol=1e-4, rtol=1e-4)

    # --- default (large-tile) config on the same ragged batch ---
    value_def = jax.block_until_ready(critic_forward(state_big, w1, b1, w2, b2))
    assert value_def.shape == (big_b, 1)
    assert jnp.allclose(value_def, ref_big, atol=1e-4, rtol=1e-4)

    # --- bf16 streamed-input path: state is ALREADY bf16 (no wrapper cast) ---
    state_bf16 = state_big.astype(jnp.bfloat16)
    value_bf16 = jax.block_until_ready(
        critic_forward(state_bf16, w1, b1, w2, b2, tile_b=128))
    xb = state_bf16.astype(jnp.float32)
    w1b = w1.astype(jnp.bfloat16).astype(jnp.float32)
    ref_bf16 = jnp.maximum(xb @ w1b + b1, 0.0) @ w2 + b2
    assert jnp.allclose(value_bf16, ref_bf16, atol=2e-3, rtol=2e-3)

    print("KERNEL_OK")
</pallas_src>

<mosaic_0001>
module attributes {stable_mosaic.version = 11 : i64} {
  func.func @_critic_kernel(%arg0: i32, %arg1: memref<8x32xf32, #tpu.memory_space<vmem>>, %arg2: memref<32x64xf32, #tpu.memory_space<vmem>>, %arg3: memref<1x64xf32, #tpu.memory_space<vmem>>, %arg4: memref<64x1xf32, #tpu.memory_space<vmem>>, %arg5: memref<1xf32, #tpu.memory_space<smem>>, %arg6: memref<8x1xf32, #tpu.memory_space<vmem>>) attributes {dimension_semantics = [#tpu.dimension_semantics<parallel>], iteration_bounds = array<i64: 1>, scalar_prefetch = 0 : i64, scratch_operands = 0 : i64, tpu.core_type = #tpu.core_type<tc>, window_params = [{transform_indices = @transform_0, window_bounds = array<i64: 8, 32>}, {pipeline_mode = #tpu.pipeline_mode<synchronous>, transform_indices = @transform_1, window_bounds = array<i64: 32, 64>}, {pipeline_mode = #tpu.pipeline_mode<synchronous>, transform_indices = @transform_2, window_bounds = array<i64: 1, 64>}, {pipeline_mode = #tpu.pipeline_mode<synchronous>, transform_indices = @transform_3, window_bounds = array<i64: 64, 1>}, {transform_indices = @transform_4, window_bounds = array<i64: 1>}, {transform_indices = @transform_5, window_bounds = array<i64: 8, 1>}]} {
    %c0 = arith.constant 0 : index
    %c0_0 = arith.constant 0 : index
    %0 = vector.load %arg1[%c0, %c0_0] : memref<8x32xf32, #tpu.memory_space<vmem>>, vector<8x32xf32>
    %c0_1 = arith.constant 0 : index
    %c0_2 = arith.constant 0 : index
    %1 = vector.load %arg2[%c0_1, %c0_2] : memref<32x64xf32, #tpu.memory_space<vmem>>, vector<32x64xf32>
    %cst = arith.constant dense<0.000000e+00> : vector<8x64xf32>
    %2 = tpu.matmul %0, %1, %cst {dimension_numbers = #tpu.dot_dimension_numbers<[1], [0], [0], [1], [0, 0, 1, 1], [], []>} : vector<8x32xf32>, vector<32x64xf32>, vector<8x64xf32> -> vector<8x64xf32>
    %c0_3 = arith.constant 0 : index
    %c0_4 = arith.constant 0 : index
    %3 = vector.load %arg3[%c0_3, %c0_4] : memref<1x64xf32, #tpu.memory_space<vmem>>, vector<1x64xf32>
    %4 = vector.broadcast %3 : vector<1x64xf32> to vector<8x64xf32>
    %5 = arith.addf %2, %4 : vector<8x64xf32>
    %cst_5 = arith.constant 0.000000e+00 : f32
    %6 = vector.broadcast %cst_5 : f32 to vector<8x64xf32>
    %7 = arith.maximumf %5, %6 : vector<8x64xf32>
    %c0_6 = arith.constant 0 : index
    %c0_7 = arith.constant 0 : index
    %8 = vector.load %arg4[%c0_6, %c0_7] : memref<64x1xf32, #tpu.memory_space<vmem>>, vector<64x1xf32>
    %cst_8 = arith.constant dense<0.000000e+00> : vector<8x1xf32>
    %9 = tpu.matmul %7, %8, %cst_8 {dimension_numbers = #tpu.dot_dimension_numbers<[1], [0], [0], [1], [0, 0, 1, 1], [], []>} : vector<8x64xf32>, vector<64x1xf32>, vector<8x1xf32> -> vector<8x1xf32>
    %c0_9 = arith.constant 0 : index
    %10 = memref.load %arg5[%c0_9] : memref<1xf32, #tpu.memory_space<smem>>
    %11 = vector.broadcast %10 : f32 to vector<8x1xf32>
    %12 = arith.addf %9, %11 : vector<8x1xf32>
    %c0_10 = arith.constant 0 : index
    %c0_11 = arith.constant 0 : index
    %13 = vector.load %arg6[%c0_10, %c0_11] : memref<8x1xf32, #tpu.memory_space<vmem>>, vector<8x1xf32>
    tpu.vector_store %arg6[%c0_10, %c0_11], %12 {strides = array<i32>} : memref<8x1xf32, #tpu.memory_space<vmem>>, vector<8x1xf32>,
    return
  }
  func.func @transform_0(%arg0: i32) -> (i32, i32) {
    %c0_i32 = arith.constant 0 : i32
    %c0_i32_0 = arith.constant 0 : i32
    return %arg0, %c0_i32 : i32, i32
  }
  func.func @transform_1(%arg0: i32) -> (i32, i32) {
    %c0_i32 = arith.constant 0 : i32
    %c0_i32_0 = arith.constant 0 : i32
    %c0_i32_1 = arith.constant 0 : i32
    return %c0_i32, %c0_i32_0 : i32, i32
  }
  func.func @transform_2(%arg0: i32) -> (i32, i32) {
    %c0_i32 = arith.constant 0 : i32
    %c0_i32_0 = arith.constant 0 : i32
    %c0_i32_1 = arith.constant 0 : i32
    return %c0_i32, %c0_i32_0 : i32, i32
  }
  func.func @transform_3(%arg0: i32) -> (i32, i32) {
    %c0_i32 = arith.constant 0 : i32
    %c0_i32_0 = arith.constant 0 : i32
    %c0_i32_1 = arith.constant 0 : i32
    return %c0_i32, %c0_i32_0 : i32, i32
  }
  func.func @transform_4(%arg0: i32) -> i32 {
    %c0_i32 = arith.constant 0 : i32
    %c0_i32_0 = arith.constant 0 : i32
    return %c0_i32 : i32
  }
  func.func @transform_5(%arg0: i32) -> (i32, i32) {
    %c0_i32 = arith.constant 0 : i32
    %c0_i32_0 = arith.constant 0 : i32
    return %arg0, %c0_i32 : i32, i32
  }
}

</mosaic_0001>

<bundles_post_ra>
// kernel: tpu_custom_call.1
= control target key start
LH: loop header
LB: loop body
LE: loop exit
PB: predicated region body
PF: predicated region fallthrough
CT: control target
= control target key end

     0   :  { %v247_v0 = vmov 0.0   ;;  %vm248_vm0 = vmmov 0   ;;  %vm33_vm1 = vcmask 261120   ;;  %vm118_vm2 = vcmask 523264   ;;  %s329_s1 = inlined_call_operand.vmem [shape: f32[32,64], index: 1, kind: input, shape index: {}]   ;;  %s330_s3 = inlined_call_operand.vmem [shape: f32[64,1], index: 3, kind: input, shape index: {}]   ;;  %s331_s0 = inlined_call_operand.vmem [shape: f32[8,32], index: 0, kind: input, shape index: {}]   ;;  %s332_s2 = inlined_call_operand.vmem [shape: f32[1,64], index: 2, kind: input, shape index: {}]   ;;  %s333_s4 = inlined_call_operand.<no memory space> [shape: f32[1], index: 4, kind: input, shape index: {}]   ;;  %s334_s5 = inlined_call_operand.vmem [shape: f32[8,1], index: 5, kind: output, shape index: {}]  }
   0x1   :  { %215 = vmatprep.subr.mxu0 %v247_v0  ;;  %v25_v1 = vld [vmem:[%s329_s1 + $0x18] sm:$0xff]  ;;  %v24_v2 = vld [vmem:[%s329_s1 + $0x10] sm:$0xff]  ;;  %223 = vmatprep.mubr.msk.f32.mxu0 %vm248_vm0, %v247_v0  ;;  %v23_v4 = vld [vmem:[%s329_s1 + $0x8] sm:$0xff]  ;;  %v117_v19 = vstv %s333_s4  ;;  %vm192_vm3 = vcmask 7168  }
   0x2   :  { %216 = vmatpush3.msra.mxu0 %v25_v1  ;;  %226 = vmatprep.subr.mxu1 %v247_v0  ;;  %v115_v3 = vld [vmem:[%s330_s3 + $0x38] sm:$0xff]  ;;  %v114_v5 = vld [vmem:[%s330_s3 + $0x30] sm:$0xff]  ;;  %v113_v6 = vld [vmem:[%s330_s3 + $0x28] sm:$0xff] }
   0x3   :  { %217 = vmatprep.subr.mxu0 %v247_v0  ;;  %227 = vmatpush3.msra.mxu1 %v115_v3  ;;  %v22_v7 = vld [vmem:[%s329_s1] sm:$0xff]  ;;  %v111_v10 = vld [vmem:[%s330_s3 + $0x18] sm:$0xff]  ;;  %v110_v11 = vld [vmem:[%s330_s3 + $0x10] sm:$0xff] }
   0x4   :  { %218 = vmatpush3.msra.mxu0 %v24_v2  ;;  %228 = vmatprep.subr.mxu1 %v247_v0  ;;  %v21_v8 = vld [vmem:[%s331_s0] sm:$0xff]  ;;  %v109_v12 = vld [vmem:[%s330_s3 + $0x8] sm:$0xff] }
   0x5   :  { %219 = vmatprep.subr.mxu0 %v247_v0  ;;  %229 = vmatpush3.msra.mxu1 %v114_v5  ;;  %v112_v9 = vld [vmem:[%s330_s3 + $0x20] sm:$0xff] }
   0x6   :  { %220 = vmatpush3.msra.mxu0 %v23_v4  ;;  %230 = vmatprep.subr.mxu1 %v247_v0  ;;  %v108_v13 = vld [vmem:[%s330_s3] sm:$0xff] }
   0x7   :  { %221 = vmatprep.subr.mxu0 %v247_v0  ;;  %231 = vmatpush3.msra.mxu1 %v113_v6  ;;  %v198_v14 = vld [vmem:[%s332_s2] ss:$0 sm:$0xff] }
   0x8   :  { %222 = vmatpush3.msra.mxu0 %v22_v7  ;;  %232 = vmatprep.subr.mxu1 %v247_v0 }
   0x9   :  { %224 = vmatmul.mubr.msk.f32.vlgmr.msra.gmra.mxu0 %vm33_vm1, %v21_v8  ;;  %233 = vmatpush3.msra.mxu1 %v112_v9 }
   0xa   :  { %234 = vmatprep.subr.mxu1 %v247_v0  ;;  %242 = vmatprep.mubr.msk.f32.mxu1 %vm248_vm0, %v247_v0 }
   0xb   :  { %235 = vmatpush3.msra.mxu1 %v111_v10 }
   0xc   :  { %236 = vmatprep.subr.mxu1 %v247_v0 }
   0xd   :  { %237 = vmatpush3.msra.mxu1 %v110_v11 }
   0xe   :  { %238 = vmatprep.subr.mxu1 %v247_v0 }
   0xf   :  { %239 = vmatpush3.msra.mxu1 %v109_v12 }
  0x10   :  { %240 = vmatprep.subr.mxu1 %v247_v0 }
  0x11   :  { %241 = vmatpush3.msra.mxu1 %v108_v13 }
  0xc9   :  { %v103_v15 = vpop.f32.mrf.mxu0 }
  0xca   :  { %v104_v16 = vadd.f32 %v198_v14, %v103_v15 }
  0xcb   :  { %v225_v17 = vpop.f32.mrf.mxu0 }
  0xcc   :  { %v107_v18 = vmax.f32 %v104_v16, 0.0 }
  0xce   :  { %243 = vmatmul.mubr.msk.f32.vlgmr.msra.gmra.mxu1 %vm118_vm2, %v107_v18 }
 0x18e   :  { %v188_v20 = vpop.f32.mrf.mxu1 }
 0x18f   :  { %v189_v21 = vadd.f32 %v188_v20, %v117_v19 }
 0x190   :  { %v244_v22 = vpop.f32.mrf.mxu1 }
 0x191   :  { %193 = vst.msk [vmem:[%s334_s5] sm:$0xff] %vm192_vm3, %v189_v21 }

</bundles_post_ra>
